<compile_context>
chip_gen: v6e
topology: v6e:2x2x1
jax: 0.10.0
libtpu: 0.0.40
codegen_flags: <defaults>
</compile_context>

<pallas_src>
import jax
import jax.numpy as jnp
from jax.experimental import pallas as pl
from jax.experimental.pallas import tpu as pltpu


def _linear_kernel(x_ref, wt_ref, b_ref, o_ref):
    # x: (tile_n, order), wt: (order, modes), b: (1, modes) -> o: (tile_n, modes)
    acc = jnp.dot(x_ref[...], wt_ref[...], preferred_element_type=jnp.float32)
    o_ref[...] = (acc + b_ref[...]).astype(o_ref.dtype)


def _choose_row_tile(n, tile_n):
    """Row tile: multiple of 8 (f32 sublane) when tiling; full N otherwise.
    Keep grid_n >= 2 when there is enough work so v7x's 2nd TC isn't idle."""
    if n <= 8:
        return n                      # full-dim block, always legal
    tn = min(tile_n, n)
    if n >= 16:
        tn = min(tn, n // 2)          # guarantee at least 2 grid steps
    tn = max(8, (tn // 8) * 8)        # round down to sublane multiple
    return tn


def linear_model_forward(poly_h, weight, bias, *, tile_n=4096, out_dtype=None):
    """poly_h: (N, order); weight: (modes, order); bias: (modes,) -> (N, modes).

    Same math as torch.nn.Linear: y = poly_h @ weight.T + bias.
    """
    n, order = poly_h.shape
    modes = weight.shape[0]
    out_dtype = poly_h.dtype if out_dtype is None else out_dtype

    # One-time, tiny wrapper-side relayouts (weight is <= a few KiB).
    wt = weight.T                      # (order, modes)
    b2d = bias.reshape(1, modes)       # (1, modes)

    tn = _choose_row_tile(n, tile_n)
    grid_n = pl.cdiv(n, tn)

    itemsize = jnp.dtype(poly_h.dtype).itemsize
    out_itemsize = jnp.dtype(out_dtype).itemsize
    cost = pl.CostEstimate(
        flops=2 * n * order * modes,
        transcendentals=0,
        bytes_accessed=(
            itemsize * (n * order + order * modes + modes)
            + out_itemsize * n * modes
        ),
    )

    out = pl.pallas_call(
        _linear_kernel,
        out_shape=jax.ShapeDtypeStruct((n, modes), out_dtype),
        grid=(grid_n,),
        in_specs=[
            pl.BlockSpec((tn, order), lambda i: (i, 0)),     # row tiles, pipelined
            pl.BlockSpec((order, modes), lambda i: (0, 0)),  # weight: VMEM-resident
            pl.BlockSpec((1, modes), lambda i: (0, 0)),      # bias:   VMEM-resident
        ],
        out_specs=pl.BlockSpec((tn, modes), lambda i: (i, 0)),
        compiler_params=pltpu.CompilerParams(
            dimension_semantics=("parallel",),   # v7x: shard row blocks over 2 TCs
            vmem_limit_bytes=32 * 1024 * 1024,   # plenty of headroom at tn=4096
        ),
        cost_estimate=cost,
    )(poly_h, wt, b2d)

    return out


if __name__ == "__main__":
    # LinearModel(modes, order): fc = nn.Linear(order, modes)
    modes, order = 32, 8
    n = 64  # batch of polynomial-feature rows

    key = jax.random.PRNGKey(0)
    k_x, k_w, k_b = jax.random.split(key, 3)

    # Deterministic synthetic parameters (same shapes as torch's nn.Linear):
    # weight: (modes, order), bias: (modes,)
    bound = 1.0 / (order ** 0.5)
    weight = jax.random.uniform(k_w, (modes, order), jnp.float32, -bound, bound)
    bias = jax.random.uniform(k_b, (modes,), jnp.float32, -bound, bound)

    poly_h = jax.random.normal(k_x, (n, order), jnp.float32)

    # With n=64 the tile chooser picks tn=32 -> a 2-step "parallel" grid, so
    # the test exercises the pipelined / multi-TensorCore path.
    out = linear_model_forward(poly_h, weight, bias)
    out = jax.block_until_ready(out)

    # Reference check against plain JAX (same math as torch.nn.Linear).
    ref = poly_h @ weight.T + bias
    assert out.shape == (n, modes)
    assert jnp.allclose(out, ref, atol=1e-5, rtol=1e-5)

    print("KERNEL_OK")
</pallas_src>

<mosaic_0001>
module attributes {stable_mosaic.version = 11 : i64} {
  func.func @_linear_kernel(%arg0: i32, %arg1: memref<32x8xf32, #tpu.memory_space<vmem>>, %arg2: memref<8x32xf32, #tpu.memory_space<vmem>>, %arg3: memref<1x32xf32, #tpu.memory_space<vmem>>, %arg4: memref<32x32xf32, #tpu.memory_space<vmem>>) attributes {dimension_semantics = [#tpu.dimension_semantics<parallel>], iteration_bounds = array<i64: 2>, scalar_prefetch = 0 : i64, scratch_operands = 0 : i64, tpu.core_type = #tpu.core_type<tc>, window_params = [{transform_indices = @transform_0, window_bounds = array<i64: 32, 8>}, {pipeline_mode = #tpu.pipeline_mode<synchronous>, transform_indices = @transform_1, window_bounds = array<i64: 8, 32>}, {pipeline_mode = #tpu.pipeline_mode<synchronous>, transform_indices = @transform_2, window_bounds = array<i64: 1, 32>}, {transform_indices = @transform_3, window_bounds = array<i64: 32, 32>}]} {
    %c0 = arith.constant 0 : index
    %c0_0 = arith.constant 0 : index
    %0 = vector.load %arg1[%c0, %c0_0] : memref<32x8xf32, #tpu.memory_space<vmem>>, vector<32x8xf32>
    %c0_1 = arith.constant 0 : index
    %c0_2 = arith.constant 0 : index
    %1 = vector.load %arg2[%c0_1, %c0_2] : memref<8x32xf32, #tpu.memory_space<vmem>>, vector<8x32xf32>
    %cst = arith.constant dense<0.000000e+00> : vector<32x32xf32>
    %2 = tpu.matmul %0, %1, %cst {dimension_numbers = #tpu.dot_dimension_numbers<[1], [0], [0], [1], [0, 0, 1, 1], [], []>} : vector<32x8xf32>, vector<8x32xf32>, vector<32x32xf32> -> vector<32x32xf32>
    %c0_3 = arith.constant 0 : index
    %c0_4 = arith.constant 0 : index
    %3 = vector.load %arg3[%c0_3, %c0_4] : memref<1x32xf32, #tpu.memory_space<vmem>>, vector<1x32xf32>
    %4 = vector.broadcast %3 : vector<1x32xf32> to vector<32x32xf32>
    %5 = arith.addf %2, %4 : vector<32x32xf32>
    %c0_5 = arith.constant 0 : index
    %c0_6 = arith.constant 0 : index
    %6 = vector.load %arg4[%c0_5, %c0_6] : memref<32x32xf32, #tpu.memory_space<vmem>>, vector<32x32xf32>
    tpu.vector_store %arg4[%c0_5, %c0_6], %5 {strides = array<i32>} : memref<32x32xf32, #tpu.memory_space<vmem>>, vector<32x32xf32>,
    return
  }
  func.func @transform_0(%arg0: i32) -> (i32, i32) {
    %c0_i32 = arith.constant 0 : i32
    %c0_i32_0 = arith.constant 0 : i32
    return %arg0, %c0_i32 : i32, i32
  }
  func.func @transform_1(%arg0: i32) -> (i32, i32) {
    %c0_i32 = arith.constant 0 : i32
    %c0_i32_0 = arith.constant 0 : i32
    %c0_i32_1 = arith.constant 0 : i32
    return %c0_i32, %c0_i32_0 : i32, i32
  }
  func.func @transform_2(%arg0: i32) -> (i32, i32) {
    %c0_i32 = arith.constant 0 : i32
    %c0_i32_0 = arith.constant 0 : i32
    %c0_i32_1 = arith.constant 0 : i32
    return %c0_i32, %c0_i32_0 : i32, i32
  }
  func.func @transform_3(%arg0: i32) -> (i32, i32) {
    %c0_i32 = arith.constant 0 : i32
    %c0_i32_0 = arith.constant 0 : i32
    return %arg0, %c0_i32 : i32, i32
  }
}

</mosaic_0001>

<bundles_post_ra>
// kernel: tpu_custom_call.1
= control target key start
LH: loop header
LB: loop body
LE: loop exit
PB: predicated region body
PF: predicated region fallthrough
CT: control target
= control target key end

     0   :  { %s412_s12 = smov 0   ;;  %s435_s0 = inlined_call_operand.vmem [shape: f32[64,8], index: 0, kind: input, shape index: {}]   ;;  %s436_s1 = inlined_call_operand.vmem [shape: f32[8,32], index: 1, kind: input, shape index: {}]   ;;  %s437_s2 = inlined_call_operand.vmem [shape: f32[1,32], index: 2, kind: input, shape index: {}]   ;;  %s438_s3 = inlined_call_operand.vmem [shape: f32[64,32], index: 3, kind: output, shape index: {}]  }
   0x1 LB: > { %s345_s13 = sadd.s32 4294967295, %s390_s12   ;;  %p349_p0 = scmp.ge.s32.totalorder %s390_s12, 1  ;;  %s390_s12 = sphi %s412_s12, %s13_s12  }
   0x2   : > { %p138_p1 = scmp.lt.s32.totalorder %s390_s12, 3 }
   0x4   : > { %p139_p2 = pnand %p349_p0, %p138_p1 }
   0x5   : > { %s350_s16 = sshll.u32 (!%p139_p2), %s345_s13, 2 }
   0x6   : > { %142 = sbr.rel (%p139_p2) target bundleno = 214 (0xd6), region = 32  ;;  %p163_p3 = scmp.lt.s32.totalorder (!%p139_p2), %s350_s16, 7 }
   0xb   : > { %v178_v0 = vld [vmem:[%s436_s1] sm:$0xff]  ;;  %s440_s16 = smov (!%p163_p3, %s350_s16), 7  ;;  %vm186_vm0 = vcmask 64512   ;;  %vm284_vm1 = vcmask 261120  }
   0xc   : > { %366 = vmatprep.subr.mxu0 %v178_v0  ;;  %374 = vmatprep.subr.mxu1 %v178_v0  ;;  %s351_s17 = sshll.u32 %s440_s16, 3  ;;  %v354_v7 = vld [vmem:[%s437_s2] ss:$0 sm:$0xff] }
   0xd   : > { %367 = vmatpush3.msra.mxu0 %v178_v0  ;;  %375 = vmatpush3.msra.mxu1 %v178_v0  ;;  %s166_s20 = scalar_lea.vmem %s435_s0, %s351_s17  ;;  %s172_s25 = scalar_lea.vmem %s438_s3, %s351_s17 }
   0xe   : > { %v174_v1 = vld [vmem:[%s166_s20] sm:$0xff]  ;;  %v176_v2 = vld [vmem:[%s166_s20 + $0x10] sm:$0xff]  ;;  %v175_v3 = vld [vmem:[%s166_s20 + $0x8] sm:$0xff] }
   0xf   : > { %368 = vmatprep.mubr.msk.f32.mxu0 %vm186_vm0, %v174_v1  ;;  %371 = vmatprep.mubr.msk.f32.mxu1 %vm186_vm0, %v176_v2  ;;  %v177_v4 = vld [vmem:[%s166_s20 + $0x18] sm:$0xff] }
  0x10   : > { %369 = vmatmul.mubr.msk.f32.vlgmr.msra.gmra.mxu0 %vm186_vm0, %v175_v3  ;;  %372 = vmatmul.mubr.msk.f32.vlgmr.msra.gmra.mxu1 %vm186_vm0, %v177_v4 }
  0xd0   : > { %v370_v5 = vpop.f32.mrf.mxu0  ;;  %v373_v6 = vpop.f32.mrf.mxu1 }
  0xd1   : > { %v271_v11 = vadd.f32 %v370_v5, %v354_v7  ;;  %v281_v13 = vadd.f32 %v373_v6, %v354_v7 }
  0xd2   : > { %v265_v8 = vpop.f32.mrf.mxu0  ;;  %v275_v9 = vpop.f32.mrf.mxu1 }
  0xd3   : > { %v266_v10 = vadd.f32 %v354_v7, %v265_v8  ;;  %v276_v12 = vadd.f32 %v354_v7, %v275_v9  ;;  %286 = vst.msk [vmem:[%s172_s25 + $0x8] sm:$0xff] %vm284_vm1, %v271_v11  ;;  %288 = vst.msk [vmem:[%s172_s25 + $0x18] sm:$0xff] %vm284_vm1, %v281_v13 }
  0xd5   : > { %285 = vst.msk [vmem:[%s172_s25] sm:$0xff] %vm284_vm1, %v266_v10  ;;  %287 = vst.msk [vmem:[%s172_s25 + $0x10] sm:$0xff] %vm284_vm1, %v276_v12 }
  0xd6 PF: > { %s13_s12 = sadd.s32 1, %s390_s12  }
  0xd7   : > { %p10_p4 = scmp.ge.s32.totalorder %s13_s12, 4  }
  0xd9   :  { %12 = sbr.rel (!%p10_p4) target bundleno = 1 (0x1), region = 62 }

</bundles_post_ra>
